<compile_context>
chip_gen: v7x
topology: tpu7x:2x2x1
jax: 0.10.0
libtpu: 0.0.40
codegen_flags: <defaults>
</compile_context>

<pallas_src>
import functools
import math

import jax
import jax.numpy as jnp
from jax.experimental import pallas as pl
from jax.experimental.pallas import tpu as pltpu


# ------------------------------ tile selection -------------------------------

_ROW_PREFS = (256, 128, 64, 32, 16, 8)   # sublane-axis tiles (8-aligned)
_COL_PREFS = (512, 256, 128)             # lane-axis tiles (256-multiples preferred for v6e/v7x MXU)


def _pick_tile(n, prefs):
    for p in prefs:
        if n % p == 0:
            return p
    return n                              # fall back to the full dim (always legal)


# --------------------------- tiled fused linear GEMM --------------------------

def _block_linear_kernel(*refs, activation, nk, has_gate, has_res):
    x_ref, w_ref, b_ref = refs[0], refs[1], refs[2]
    idx = 3
    gate_ref = None
    res_ref = None
    if has_gate:
        gate_ref = refs[idx]
        idx += 1
    if has_res:
        res_ref = refs[idx]
        idx += 1
    o_ref = refs[idx]
    acc_ref = refs[idx + 1]

    k_id = pl.program_id(3)

    @pl.when(k_id == 0)
    def _():
        acc_ref[...] = jnp.zeros_like(acc_ref)

    # bf16 (or f32) operands, f32 MXU accumulation.
    acc_ref[...] += jnp.dot(x_ref[0], w_ref[...],
                            preferred_element_type=jnp.float32)

    @pl.when(k_id == nk - 1)
    def _():
        y = acc_ref[...] + b_ref[...].astype(jnp.float32)
        if activation == "gelu_tanh":        # torch.nn.GELU(approximate='tanh')
            c = math.sqrt(2.0 / math.pi)
            y = 0.5 * y * (1.0 + jnp.tanh(c * (y + 0.044715 * y * y * y)))
        elif activation == "silu":
            y = y * jax.nn.sigmoid(y)
        if has_gate:                         # AdaLN gate (per-batch, per-channel)
            y = y * gate_ref[0].astype(jnp.float32)
        if has_res:                          # fused residual add
            y = y + res_ref[0].astype(jnp.float32)
        o_ref[0] = y.astype(o_ref.dtype)


def block_linear(x, w, b, *, activation="none", gate=None, residual=None,
                 out_dtype=jnp.bfloat16):
    """y = act(x @ w + b) [* gate] [+ residual].  x: [B, L, K]; w: [K, N]; b: [N];
    gate: [B, N] or None; residual: [B, L, N] or None."""
    B, L, K = x.shape
    K2, N = w.shape
    assert K2 == K
    tl = _pick_tile(L, _ROW_PREFS)
    tn = _pick_tile(N, _COL_PREFS)
    tk = _pick_tile(K, _COL_PREFS)
    nk = K // tk

    in_specs = [
        pl.BlockSpec((1, tl, tk), lambda b_, l_, j_, k_: (b_, l_, k_)),
        pl.BlockSpec((tk, tn), lambda b_, l_, j_, k_: (k_, j_)),
        pl.BlockSpec((1, tn), lambda b_, l_, j_, k_: (0, j_)),
    ]
    args = [x, w, b.reshape(1, N)]
    has_gate = gate is not None
    has_res = residual is not None
    if has_gate:
        in_specs.append(pl.BlockSpec((1, 1, tn), lambda b_, l_, j_, k_: (b_, 0, j_)))
        args.append(gate.reshape(B, 1, N))
    if has_res:
        in_specs.append(pl.BlockSpec((1, tl, tn), lambda b_, l_, j_, k_: (b_, l_, j_)))
        args.append(residual)

    return pl.pallas_call(
        functools.partial(_block_linear_kernel, activation=activation,
                          nk=nk, has_gate=has_gate, has_res=has_res),
        out_shape=jax.ShapeDtypeStruct((B, L, N), out_dtype),
        grid=(B, L // tl, N // tn, nk),
        in_specs=in_specs,
        out_specs=pl.BlockSpec((1, tl, tn), lambda b_, l_, j_, k_: (b_, l_, j_)),
        scratch_shapes=[pltpu.VMEM((tl, tn), jnp.float32)],
        compiler_params=pltpu.CompilerParams(
            dimension_semantics=("parallel", "parallel", "parallel", "arbitrary")),
    )(*args)


def linear2d(x, w, b, **kw):
    """2-D convenience wrapper: x [M, K] @ w [K, N] + b."""
    return block_linear(x[None], w, b, **kw)[0]


# ------------------------ LayerNorm + AdaLN modulation ------------------------

def _ln_mod_kernel(x_ref, g_ref, b_ref, sc_ref, sh_ref, o_ref, *, eps):
    x = x_ref[0].astype(jnp.float32)                      # (tl, C)
    mu = jnp.mean(x, axis=-1, keepdims=True)
    xc = x - mu
    var = jnp.mean(xc * xc, axis=-1, keepdims=True)
    xn = xc * jax.lax.rsqrt(var + eps)
    xn = xn * g_ref[...].astype(jnp.float32) + b_ref[...].astype(jnp.float32)
    y = xn * (1.0 + sc_ref[0].astype(jnp.float32)) + sh_ref[0].astype(jnp.float32)
    o_ref[0] = y.astype(o_ref.dtype)


def layernorm_modulate(x, gamma, beta, scale, shift, eps, out_dtype=jnp.bfloat16):
    """x: [B, L, C]; gamma/beta: [C]; scale/shift: [B, C]."""
    B, L, C = x.shape
    tl = _pick_tile(L, _ROW_PREFS)
    return pl.pallas_call(
        functools.partial(_ln_mod_kernel, eps=eps),
        out_shape=jax.ShapeDtypeStruct((B, L, C), out_dtype),
        grid=(B, L // tl),
        in_specs=[pl.BlockSpec((1, tl, C), lambda b_, l_: (b_, l_, 0)),
                  pl.BlockSpec((1, C), lambda b_, l_: (0, 0)),
                  pl.BlockSpec((1, C), lambda b_, l_: (0, 0)),
                  pl.BlockSpec((1, 1, C), lambda b_, l_: (b_, 0, 0)),
                  pl.BlockSpec((1, 1, C), lambda b_, l_: (b_, 0, 0))],
        out_specs=pl.BlockSpec((1, tl, C), lambda b_, l_: (b_, l_, 0)),
        compiler_params=pltpu.CompilerParams(
            dimension_semantics=("parallel", "parallel")),
    )(x, gamma.reshape(1, C), beta.reshape(1, C),
      scale.reshape(B, 1, C), shift.reshape(B, 1, C))


# ---------------------------------- RMSNorm -----------------------------------

def _rms_kernel(x_ref, w_ref, o_ref, *, eps):
    x = x_ref[0].astype(jnp.float32)
    ms = jnp.mean(x * x, axis=-1, keepdims=True)
    o_ref[0] = (x * jax.lax.rsqrt(ms + eps)
                * w_ref[...].astype(jnp.float32)).astype(o_ref.dtype)


def rms_norm(x, w, eps, out_dtype=jnp.bfloat16):
    """WanRMSNorm over the full channel dim. x: [B, L, C]; w: [C]."""
    B, L, C = x.shape
    tl = _pick_tile(L, _ROW_PREFS)
    return pl.pallas_call(
        functools.partial(_rms_kernel, eps=eps),
        out_shape=jax.ShapeDtypeStruct((B, L, C), out_dtype),
        grid=(B, L // tl),
        in_specs=[pl.BlockSpec((1, tl, C), lambda b_, l_: (b_, l_, 0)),
                  pl.BlockSpec((1, C), lambda b_, l_: (0, 0))],
        out_specs=pl.BlockSpec((1, tl, C), lambda b_, l_: (b_, l_, 0)),
        compiler_params=pltpu.CompilerParams(
            dimension_semantics=("parallel", "parallel")),
    )(x, w.reshape(1, C))


# ----------------------------- flash attention --------------------------------

def _flash_kernel(q_ref, k_ref, v_ref, m_ref, o_ref, m_sc, l_sc, acc_sc,
                  *, scale, nk):
    kv = pl.program_id(3)

    @pl.when(kv == 0)
    def _():
        m_sc[...] = jnp.full_like(m_sc, -jnp.inf)
        l_sc[...] = jnp.zeros_like(l_sc)
        acc_sc[...] = jnp.zeros_like(acc_sc)

    q = q_ref[0, 0]                                        # (tq, D) bf16
    k = k_ref[0, 0]                                        # (tk, D) bf16
    # Contract on D without materializing k.T (no XLU transpose).
    s = jax.lax.dot_general(q, k, (((1,), (1,)), ((), ())),
                            preferred_element_type=jnp.float32) * scale
    s = s + m_ref[0]                                       # (1, tk) additive key-mask bias (f32)

    m_prev = m_sc[...]
    m_new = jnp.maximum(m_prev, jnp.max(s, axis=-1, keepdims=True))
    alpha = jnp.exp(m_prev - m_new)
    p = jnp.exp(s - m_new)
    l_sc[...] = alpha * l_sc[...] + jnp.sum(p, axis=-1, keepdims=True)
    acc_sc[...] = alpha * acc_sc[...] + jnp.dot(
        p.astype(v_ref.dtype), v_ref[0, 0], preferred_element_type=jnp.float32)
    m_sc[...] = m_new

    @pl.when(kv == nk - 1)
    def _():
        o_ref[0, 0] = (acc_sc[...] *
                       pl.reciprocal(l_sc[...], approx=True)).astype(o_ref.dtype)


def flash_attention(q, k, v, kmask, scale):
    """q: [B, H, Lq, D]; k, v: [B, H, Lk, D] (bf16); kmask: [B, Lk] additive f32 bias."""
    B, H, Lq, D = q.shape
    Lk = k.shape[2]
    tq = _pick_tile(Lq, _ROW_PREFS)
    tk = _pick_tile(Lk, _COL_PREFS)    # 128-multiple (or full) so the mask lane dim stays legal
    nk = Lk // tk
    m = kmask.reshape(B, 1, Lk).astype(jnp.float32)
    return pl.pallas_call(
        functools.partial(_flash_kernel, scale=scale, nk=nk),
        out_shape=jax.ShapeDtypeStruct((B, H, Lq, D), q.dtype),
        grid=(B, H, Lq // tq, nk),
        in_specs=[pl.BlockSpec((1, 1, tq, D), lambda b, h, qi, ki: (b, h, qi, 0)),
                  pl.BlockSpec((1, 1, tk, D), lambda b, h, qi, ki: (b, h, ki, 0)),
                  pl.BlockSpec((1, 1, tk, D), lambda b, h, qi, ki: (b, h, ki, 0)),
                  pl.BlockSpec((1, 1, tk), lambda b, h, qi, ki: (b, 0, ki))],
        out_specs=pl.BlockSpec((1, 1, tq, D), lambda b, h, qi, ki: (b, h, qi, 0)),
        scratch_shapes=[pltpu.VMEM((tq, 1), jnp.float32),
                        pltpu.VMEM((tq, 1), jnp.float32),
                        pltpu.VMEM((tq, D), jnp.float32)],
        compiler_params=pltpu.CompilerParams(
            dimension_semantics=("parallel", "parallel", "parallel", "arbitrary")),
    )(q, k, v, m)


# ------------------------------- JAX glue ops ---------------------------------

def sinusoidal_embedding_1d(dim, t):
    half = dim // 2
    freqs = jnp.power(10000.0, -jnp.arange(half, dtype=jnp.float32) / half)
    sinusoid = t.astype(jnp.float32)[:, None] * freqs[None, :]
    return jnp.concatenate([jnp.cos(sinusoid), jnp.sin(sinusoid)], axis=1)


def build_rope_tables(d_head, grid_sizes, seq_len, max_len=1024, theta=10000.0):
    """Per-sample cos/sin tables [B, seq_len, d_head//2] for 3-D RoPE."""
    def rope_angles(dim):
        exps = jnp.arange(0, dim, 2, dtype=jnp.float32) / dim
        inv = 1.0 / (theta ** exps)
        pos = jnp.arange(max_len, dtype=jnp.float32)
        return pos[:, None] * inv[None, :]

    a_t = rope_angles(d_head - 4 * (d_head // 6))
    a_h = rope_angles(2 * (d_head // 6))
    a_w = rope_angles(2 * (d_head // 6))
    cos_list, sin_list = [], []
    for (f, h, w) in grid_sizes:
        ang = jnp.concatenate([
            jnp.broadcast_to(a_t[:f][:, None, None, :], (f, h, w, a_t.shape[1])),
            jnp.broadcast_to(a_h[:h][None, :, None, :], (f, h, w, a_h.shape[1])),
            jnp.broadcast_to(a_w[:w][None, None, :, :], (f, h, w, a_w.shape[1])),
        ], axis=-1).reshape(f * h * w, -1)
        pad = seq_len - f * h * w
        cos = jnp.concatenate([jnp.cos(ang), jnp.ones((pad, ang.shape[1]), jnp.float32)], axis=0)
        sin = jnp.concatenate([jnp.sin(ang), jnp.zeros((pad, ang.shape[1]), jnp.float32)], axis=0)
        cos_list.append(cos)
        sin_list.append(sin)
    return jnp.stack(cos_list), jnp.stack(sin_list)


def rope_apply(x, cos, sin):
    """x: [B, H, L, D]; cos/sin: [B, L, D//2]. Complex pair = (even, odd) lanes."""
    xf = x.astype(jnp.float32)
    xr = xf[..., 0::2]
    xi = xf[..., 1::2]
    c = cos[:, None, :, :]
    s = sin[:, None, :, :]
    yr = xr * c - xi * s
    yi = xr * s + xi * c
    return jnp.stack([yr, yi], axis=-1).reshape(x.shape).astype(x.dtype)


# ---------------------------- WanAttentionBlock --------------------------------

def wan_block(p, x, e0, seq_mask, rope_cos, rope_sin, context, ctx_mask, cfg):
    B, L, C = x.shape
    H = cfg["num_heads"]
    D = C // H
    eps = cfg["eps"]
    scale = D ** -0.5
    ones_c = jnp.ones((C,), jnp.float32)
    zeros_c = jnp.zeros((C,), jnp.float32)
    zeros_mod = jnp.zeros((B, C), jnp.float32)

    mod = p["modulation"] + e0                        # [1,6,C] + [B,6,C] -> [B,6,C]
    e = [mod[:, i, :] for i in range(6)]

    def split_heads(t):                               # [B, L', C] -> [B, H, L', D]
        return jnp.transpose(t.reshape(B, -1, H, D), (0, 2, 1, 3))

    def merge_heads(t):                               # [B, H, L', D] -> [B, L', C]
        return jnp.transpose(t, (0, 2, 1, 3)).reshape(B, -1, C)

    # --- self attention: fused QKV GEMM, RMSNorm(q/k), 3-D RoPE, flash attn ---
    xn = layernorm_modulate(x, ones_c, zeros_c, e[1], e[0], eps)
    qkv = block_linear(xn, p["sa_qkv_w"], p["sa_qkv_b"])          # [B, L, 3C] bf16
    q = rms_norm(qkv[..., :C], p["sa_nq"], eps)
    k = rms_norm(qkv[..., C:2 * C], p["sa_nk"], eps)
    v = qkv[..., 2 * C:]
    q = rope_apply(split_heads(q), rope_cos, rope_sin)
    k = rope_apply(split_heads(k), rope_cos, rope_sin)
    y = merge_heads(flash_attention(q, k, split_heads(v), seq_mask, scale))
    # output projection with fused AdaLN gate + residual add
    x = block_linear(y, p["sa_o_w"], p["sa_o_b"], gate=e[2], residual=x)

    # --- cross attention (t2v) ---
    xn3 = layernorm_modulate(x, p["norm3_g"], p["norm3_b"], zeros_mod, zeros_mod, eps)
    q = rms_norm(block_linear(xn3, p["ca_q_w"], p["ca_q_b"]), p["ca_nq"], eps)
    k = rms_norm(block_linear(context, p["ca_k_w"], p["ca_k_b"]), p["ca_nk"], eps)
    v = block_linear(context, p["ca_v_w"], p["ca_v_b"])
    y = merge_heads(flash_attention(split_heads(q), split_heads(k),
                                    split_heads(v), ctx_mask, scale))
    x = block_linear(y, p["ca_o_w"], p["ca_o_b"], residual=x)

    # --- FFN (tanh-GELU fused into w1 GEMM; gate+residual fused into w2 GEMM) ---
    xn2 = layernorm_modulate(x, ones_c, zeros_c, e[4], e[3], eps)
    h = block_linear(xn2, p["ffn_w1"], p["ffn_b1"], activation="gelu_tanh")   # bf16 intermediate
    x = block_linear(h, p["ffn_w2"], p["ffn_b2"], gate=e[5], residual=x)
    return x


# -------------------------------- full forward ---------------------------------

def wan_forward(params, cfg, x_list, t, context_list, seq_len):
    dim = cfg["dim"]
    B = len(x_list)
    pt, ph, pw = cfg["patch_size"]
    eps = cfg["eps"]

    # time embeddings (kept f32, matching the autocast-disabled block)
    temb = sinusoidal_embedding_1d(cfg["freq_dim"], t)                        # [B, freq_dim]
    e = linear2d(linear2d(temb, params["time_w1"], params["time_b1"],
                          activation="silu", out_dtype=jnp.float32),
                 params["time_w2"], params["time_b2"], out_dtype=jnp.float32)  # [B, dim]
    e0 = linear2d(jax.nn.silu(e), params["tproj_w"], params["tproj_b"],
                  out_dtype=jnp.float32).reshape(B, 6, dim)

    # patch embedding: Conv3d(kernel=stride=patch) == patch-extract + one batched GEMM
    grid_sizes, patch_rows = [], []
    for u in x_list:
        Cin, F_, H_, W_ = u.shape
        gf, gh, gw = F_ // pt, H_ // ph, W_ // pw
        grid_sizes.append((gf, gh, gw))
        pr = u.reshape(Cin, gf, pt, gh, ph, gw, pw)
        pr = jnp.transpose(pr, (1, 3, 5, 0, 2, 4, 6)).reshape(
            gf * gh * gw, Cin * pt * ph * pw)
        assert pr.shape[0] <= seq_len
        patch_rows.append(jnp.pad(pr, ((0, seq_len - pr.shape[0]), (0, 0))))
    seq_lens = [gf * gh * gw for (gf, gh, gw) in grid_sizes]
    patches = jnp.stack(patch_rows).astype(jnp.bfloat16)      # [B, seq_len, Cin*pt*ph*pw]
    x = block_linear(patches, params["patch_w"], params["patch_b"])           # [B, seq_len, dim]

    # text embedding (exact-erf GELU kept in glue JAX between the two GEMMs)
    text_len = cfg["text_len"]
    ctx = jnp.stack([jnp.pad(c, ((0, text_len - c.shape[0]), (0, 0))) for c in context_list])
    h = block_linear(ctx.astype(jnp.bfloat16), params["text_w1"], params["text_b1"],
                     out_dtype=jnp.float32)
    h = jax.nn.gelu(h, approximate=False).astype(jnp.bfloat16)
    context = block_linear(h, params["text_w2"], params["text_b2"])           # [B, text_len, dim]

    # key masks (additive f32 bias; logits stay f32 inside the flash kernel) + RoPE tables
    kidx = jnp.arange(seq_len)
    seq_mask = jnp.stack(
        [jnp.where(kidx < sl, 0.0, -1e30) for sl in seq_lens]).astype(jnp.float32)
    ctx_mask = jnp.zeros((B, text_len), jnp.float32)          # context_lens=None -> no masking
    D = dim // cfg["num_heads"]
    rope_cos, rope_sin = build_rope_tables(D, grid_sizes, seq_len)

    for bp in params["blocks"]:
        x = wan_block(bp, x, e0, seq_mask, rope_cos, rope_sin, context, ctx_mask, cfg)

    # head: (norm(x) * (1 + e1) + e0_shift) @ W + b
    hp = params["head"]
    mod = hp["modulation"] + e[:, None, :]                    # [B, 2, dim]
    xn = layernorm_modulate(x, hp["norm_g"], hp["norm_b"], mod[:, 1, :], mod[:, 0, :], eps)
    out = block_linear(xn, hp["w"], hp["b"], out_dtype=jnp.float32)           # [B, L, out_patch]

    # unpatchify
    c_out = cfg["out_dim"]
    results = []
    for i, (gf, gh, gw) in enumerate(grid_sizes):
        u = out[i, : gf * gh * gw].reshape(gf, gh, gw, pt, ph, pw, c_out)
        u = jnp.transpose(u, (6, 0, 3, 1, 4, 2, 5))           # 'fhwpqrc -> cfphqwr'
        u = u.reshape(c_out, gf * pt, gh * ph, gw * pw)
        results.append(u.astype(jnp.float32))
    return results


# ------------------------------- parameter init --------------------------------

def init_params(key, cfg):
    dim, ffn = cfg["dim"], cfg["ffn_dim"]
    counter = [0]

    def nk():
        counter[0] += 1
        return jax.random.fold_in(key, counter[0])

    def W(shape, scale=0.02, dtype=jnp.bfloat16):
        return (jax.random.normal(nk(), shape, jnp.float32) * scale).astype(dtype)

    def Z(*shape):
        return jnp.zeros(shape, jnp.float32)

    def O(*shape):
        return jnp.ones(shape, jnp.float32)

    pt, ph, pw = cfg["patch_size"]
    pe_k = cfg["in_dim"] * pt * ph * pw
    out_patch = pt * ph * pw * cfg["out_dim"]
    params = {
        "patch_w": W((pe_k, dim)), "patch_b": Z(dim),
        "text_w1": W((cfg["text_dim"], dim)), "text_b1": Z(dim),
        "text_w2": W((dim, dim)), "text_b2": Z(dim),
        "time_w1": W((cfg["freq_dim"], dim), dtype=jnp.float32), "time_b1": Z(dim),
        "time_w2": W((dim, dim), dtype=jnp.float32), "time_b2": Z(dim),
        "tproj_w": W((dim, 6 * dim), dtype=jnp.float32), "tproj_b": Z(6 * dim),
        "blocks": [],
        "head": {
            "norm_g": O(dim), "norm_b": Z(dim),
            "w": W((dim, out_patch)), "b": Z(out_patch),
            "modulation": W((1, 2, dim), dim ** -0.5, dtype=jnp.float32),
        },
    }
    for _ in range(cfg["num_layers"]):
        params["blocks"].append({
            "modulation": W((1, 6, dim), dim ** -0.5, dtype=jnp.float32),
            # fused self-attn QKV: columns [0:C]=q, [C:2C]=k, [2C:3C]=v
            "sa_qkv_w": W((dim, 3 * dim)), "sa_qkv_b": Z(3 * dim),
            "sa_o_w": W((dim, dim)), "sa_o_b": Z(dim),
            "sa_nq": O(dim), "sa_nk": O(dim),
            "norm3_g": O(dim), "norm3_b": Z(dim),
            "ca_q_w": W((dim, dim)), "ca_q_b": Z(dim),
            "ca_k_w": W((dim, dim)), "ca_k_b": Z(dim),
            "ca_v_w": W((dim, dim)), "ca_v_b": Z(dim),
            "ca_o_w": W((dim, dim)), "ca_o_b": Z(dim),
            "ca_nq": O(dim), "ca_nk": O(dim),
            "ffn_w1": W((dim, ffn)), "ffn_b1": Z(ffn),
            "ffn_w2": W((ffn, dim)), "ffn_b2": Z(dim),
        })
    return params


# ------------------------------------ main --------------------------------------

if __name__ == "__main__":
    cfg = dict(model_type="t2v", patch_size=(1, 2, 2), text_len=16, in_dim=4,
               dim=64, ffn_dim=128, freq_dim=32, text_dim=48, out_dim=4,
               num_heads=4, num_layers=2, eps=1e-6)

    key = jax.random.PRNGKey(0)
    params = init_params(key, cfg)

    k1, k2, k3, k4 = jax.random.split(jax.random.fold_in(key, 999), 4)
    # two videos [C_in=4, F=4, H=8, W=8] -> grid (4,4,4) -> 64 tokens each
    x_list = [jax.random.normal(k1, (4, 4, 8, 8), jnp.float32),
              jax.random.normal(k2, (4, 4, 8, 8), jnp.float32)]
    t = jnp.array([3.0, 11.0], jnp.float32)
    context_list = [jax.random.normal(k3, (10, 48), jnp.float32),
                    jax.random.normal(k4, (16, 48), jnp.float32)]
    seq_len = 64

    out = wan_forward(params, cfg, x_list, t, context_list, seq_len)
    out = [jax.block_until_ready(o) for o in out]

    assert out[0].shape == (4, 4, 8, 8) and out[1].shape == (4, 4, 8, 8)
    assert all(bool(jnp.all(jnp.isfinite(o))) for o in out)
    print("KERNEL_OK")
</pallas_src>

<mosaic_0001>
module attributes {stable_mosaic.version = 11 : i64} {
  func.func @_block_linear_kernel(%arg0: i32, %arg1: i32, %arg2: i32, %arg3: i32, %arg4: memref<1x2x32xf32, #tpu.memory_space<vmem>>, %arg5: memref<32x64xf32, #tpu.memory_space<vmem>>, %arg6: memref<1x64xf32, #tpu.memory_space<vmem>>, %arg7: memref<1x2x64xf32, #tpu.memory_space<vmem>>, %arg8: memref<2x64xf32, #tpu.memory_space<vmem>>) attributes {dimension_semantics = [#tpu.dimension_semantics<parallel>, #tpu.dimension_semantics<parallel>, #tpu.dimension_semantics<parallel>, #tpu.dimension_semantics<arbitrary>], iteration_bounds = array<i64: 1, 1, 1, 1>, scalar_prefetch = 0 : i64, scratch_operands = 1 : i64, tpu.core_type = #tpu.core_type<tc>, window_params = [{transform_indices = @transform_0, window_bounds = array<i64: 1, 2, 32>}, {transform_indices = @transform_1, window_bounds = array<i64: 32, 64>}, {transform_indices = @transform_2, window_bounds = array<i64: 1, 64>}, {transform_indices = @transform_3, window_bounds = array<i64: 1, 2, 64>}]} {
    %c0_i32 = arith.constant 0 : i32
    %0 = arith.cmpi eq, %arg3, %c0_i32 : i32
    %1 = arith.extui %0 : i1 to i32
    %c0_i32_0 = arith.constant 0 : i32
    %2 = arith.cmpi ne, %1, %c0_i32_0 : i32
    scf.if %2 {
      %cst_11 = arith.constant 0.000000e+00 : f32
      %13 = vector.broadcast %cst_11 : f32 to vector<2x64xf32>
      %c0_12 = arith.constant 0 : index
      %c0_13 = arith.constant 0 : index
      %14 = vector.load %arg8[%c0_12, %c0_13] : memref<2x64xf32, #tpu.memory_space<vmem>>, vector<2x64xf32>
      tpu.vector_store %arg8[%c0_12, %c0_13], %13 {strides = array<i32>} : memref<2x64xf32, #tpu.memory_space<vmem>>, vector<2x64xf32>,
    } else {
    }
    %c0 = arith.constant 0 : index
    %c0_1 = arith.constant 0 : index
    %3 = vector.load %arg8[%c0, %c0_1] : memref<2x64xf32, #tpu.memory_space<vmem>>, vector<2x64xf32>
    %c0_2 = arith.constant 0 : index
    %c0_3 = arith.constant 0 : index
    %c0_4 = arith.constant 0 : index
    %4 = vector.load %arg4[%c0_2, %c0_3, %c0_4] : memref<1x2x32xf32, #tpu.memory_space<vmem>>, vector<1x2x32xf32>
    %5 = vector.shape_cast %4 : vector<1x2x32xf32> to vector<2x32xf32>
    %c0_5 = arith.constant 0 : index
    %c0_6 = arith.constant 0 : index
    %6 = vector.load %arg5[%c0_5, %c0_6] : memref<32x64xf32, #tpu.memory_space<vmem>>, vector<32x64xf32>
    %cst = arith.constant dense<0.000000e+00> : vector<2x64xf32>
    %7 = tpu.matmul %5, %6, %cst {dimension_numbers = #tpu.dot_dimension_numbers<[1], [0], [0], [1], [0, 0, 1, 1], [], []>} : vector<2x32xf32>, vector<32x64xf32>, vector<2x64xf32> -> vector<2x64xf32>
    %8 = arith.addf %3, %7 : vector<2x64xf32>
    %c0_7 = arith.constant 0 : index
    %c0_8 = arith.constant 0 : index
    %9 = vector.load %arg8[%c0_7, %c0_8] : memref<2x64xf32, #tpu.memory_space<vmem>>, vector<2x64xf32>
    tpu.vector_store %arg8[%c0_7, %c0_8], %8 {strides = array<i32>} : memref<2x64xf32, #tpu.memory_space<vmem>>, vector<2x64xf32>,
    %c0_i32_9 = arith.constant 0 : i32
    %10 = arith.cmpi eq, %arg3, %c0_i32_9 : i32
    %11 = arith.extui %10 : i1 to i32
    %c0_i32_10 = arith.constant 0 : i32
    %12 = arith.cmpi ne, %11, %c0_i32_10 : i32
    scf.if %12 {
      %c0_11 = arith.constant 0 : index
      %c0_12 = arith.constant 0 : index
      %13 = vector.load %arg8[%c0_11, %c0_12] : memref<2x64xf32, #tpu.memory_space<vmem>>, vector<2x64xf32>
      %c0_13 = arith.constant 0 : index
      %c0_14 = arith.constant 0 : index
      %14 = vector.load %arg6[%c0_13, %c0_14] : memref<1x64xf32, #tpu.memory_space<vmem>>, vector<1x64xf32>
      %15 = vector.broadcast %14 : vector<1x64xf32> to vector<2x64xf32>
      %16 = arith.addf %13, %15 : vector<2x64xf32>
      %17 = arith.negf %16 : vector<2x64xf32>
      %18 = math.exp %17 : vector<2x64xf32>
      %cst_15 = arith.constant 1.000000e+00 : f32
      %19 = vector.broadcast %cst_15 : f32 to vector<2x64xf32>
      %20 = arith.addf %19, %18 : vector<2x64xf32>
      %21 = arith.divf %19, %20 : vector<2x64xf32>
      %22 = arith.mulf %16, %21 : vector<2x64xf32>
      %c0_16 = arith.constant 0 : index
      %c0_17 = arith.constant 0 : index
      %c0_18 = arith.constant 0 : index
      %23 = vector.load %arg7[%c0_16, %c0_17, %c0_18] : memref<1x2x64xf32, #tpu.memory_space<vmem>>, vector<1x2x64xf32>
      %24 = vector.shape_cast %23 : vector<1x2x64xf32> to vector<2x64xf32>
      %25 = vector.shape_cast %22 : vector<2x64xf32> to vector<1x2x64xf32>
      tpu.vector_store %arg7[%c0_16, %c0_17, %c0_18], %25 {strides = array<i32>} : memref<1x2x64xf32, #tpu.memory_space<vmem>>, vector<1x2x64xf32>,
    } else {
    }
    return
  }
  func.func @transform_0(%arg0: i32, %arg1: i32, %arg2: i32, %arg3: i32) -> (i32, i32, i32) {
    %c0_i32 = arith.constant 0 : i32
    return %arg0, %arg1, %arg3 : i32, i32, i32
  }
  func.func @transform_1(%arg0: i32, %arg1: i32, %arg2: i32, %arg3: i32) -> (i32, i32) {
    %c0_i32 = arith.constant 0 : i32
    return %arg3, %arg2 : i32, i32
  }
  func.func @transform_2(%arg0: i32, %arg1: i32, %arg2: i32, %arg3: i32) -> (i32, i32) {
    %c0_i32 = arith.constant 0 : i32
    %c0_i32_0 = arith.constant 0 : i32
    return %c0_i32, %arg2 : i32, i32
  }
  func.func @transform_3(%arg0: i32, %arg1: i32, %arg2: i32, %arg3: i32) -> (i32, i32, i32) {
    %c0_i32 = arith.constant 0 : i32
    return %arg0, %arg1, %arg2 : i32, i32, i32
  }
}

</mosaic_0001>

<bundles_post_ra>
// kernel: tpu_custom_call.1
= control target key start
LH: loop header
LB: loop body
LE: loop exit
PB: predicated region body
PF: predicated region fallthrough
CT: control target
= control target key end

     0   :  { %8 = vsyncpa [#allocation4], 0  ;;  %s352_s0 = inlined_call_operand.hbm [shape: f32[1,2,32], index: 0, kind: input, shape index: {}]   ;;  %s353_s1 = inlined_call_operand.hbm [shape: f32[32,64], index: 1, kind: input, shape index: {}]   ;;  %s354_s2 = inlined_call_operand.vmem [shape: f32[1,64], index: 2, kind: input, shape index: {}]   ;;  %s355_s3 = inlined_call_operand.hbm [shape: f32[1,2,64], index: 3, kind: output, shape index: {}]  }
   0x1   :  { %9 = vsyncpa [#allocation7], 0 }
   0x2   :  { %10 = vsyncpa [#allocation5], 0  ;;  %s275_s12 = smov [#allocation3]   ;;  %s276_s14 = smov [#allocation6]  }
   0x3   :  { %s17_s13 = sshll.u32 %s275_s12, 4  ;;  %s26_s15 = sshll.u32 %s276_s14, 4  ;;  %s18_s13 = int_to_ptr.vmem [resolvable:$true] %s17_s13  ;;  %s303_s15 = int_to_ptr.vmem [resolvable:$true] %s26_s15 }
   0x4   :  { %s203_s18 = scalar_lea.hbm %s352_s0, 32 }
   0x5   :  { %p204_p0 = scmp.ne.s32.totalorder %s352_s0, %s203_s18  ;;  %p207_p1 = scmp.lt.u32.totalorder %s203_s18, %s352_s0 }
   0x7   :  { %p209_p2 = pnand %p207_p1, %p204_p0 }
   0x9   :  { %212 = shalt.err (!%p209_p2)
}
   0xa   :  { %s213_s23 = scalar_lea.vmem %s18_s13, 32  ;;  %p218_p4 = scmp.lt.s32.totalorder %s18_s13, %s18_s13 }
   0xb   :  { %p214_p3 = scmp.ne.s32.totalorder %s18_s13, %s213_s23  ;;  %p219_p5 = scmp.lt.s32.totalorder %s213_s23, %s213_s23 }
   0xd   :  { %p220_p6 = por %p219_p5, %p218_p4 }
   0xf   :  { %p221_p7 = pnand %p220_p6, %p214_p3 }
  0x11   :  { %224 = shalt.err (!%p221_p7)
}
  0x12   :  { %20 = dma.hbm_to_vmem [thread:$0]  %s352_s0, 32, %s18_s13, [#allocation4]  }
  0x13   :  { %s225_s28 = scalar_lea.hbm %s353_s1, 512 }
  0x14   :  { %p226_p8 = scmp.ne.s32.totalorder %s353_s1, %s225_s28  ;;  %p229_p9 = scmp.lt.u32.totalorder %s225_s28, %s353_s1 }
  0x16   :  { %p231_p10 = pnand %p229_p9, %p226_p8 }
  0x18   :  { %234 = shalt.err (!%p231_p10)
}
  0x19   :  { %s235_s6 = scalar_lea.vmem %s303_s15, 512  ;;  %p240_p12 = scmp.lt.s32.totalorder %s303_s15, %s303_s15 }
  0x1a   :  { %p236_p11 = scmp.ne.s32.totalorder %s303_s15, %s235_s6  ;;  %p241_p13 = scmp.lt.s32.totalorder %s235_s6, %s235_s6 }
  0x1c   :  { %p242_p0 = por %p241_p13, %p240_p12 }
  0x1e   :  { %p243_p1 = pnand %p242_p0, %p236_p11 }
  0x20   :  { %246 = shalt.err (!%p243_p1)
}
  0x21   :  { %s277_s0 = smov 128   ;;  %s278_s7 = smov 8  }
  0x22   :  { %32 = dma.hbm_to_vmem [thread:$0]  %s353_s1, 512, %s303_s15, [#allocation7], %s277_s0, %s277_s0, %s278_s7  }
  0x23   :  { %269 = dma.done.wait [#allocation4], 32  }
  0x24   :  { %270 = vsyncadd [#allocation4], 4294967264 }
  0x25   :  { %271 = dma.done.wait [#allocation7], 512  }
  0x26   :  { %272 = vsyncadd [#allocation7], 4294966784  ;;  %vm45_vm0 = vcmask 517120   ;;  %v279_v0 = vmov 0.0|0.0   ;;  %v280_v1 = vmov 0.0   ;;  %vm281_vm1 = vmmov 0  }
  0x27   :  { %185 = vmatprep.subr.bf16.mxu0 %v279_v0  ;;  %46 = vst.msk [vmem:[#allocation2] sm:$0x3] %vm45_vm0, %v280_v1  ;;  %182 = vmatprep.mubr.msk.f32.mxu0 %vm281_vm1, %v280_v1  ;;  %v49_v2 = vld [vmem:[#allocation6] sm:$0xff]  ;;  %v50_v3 = vld [vmem:[#allocation6 + $0x8] sm:$0xff]  ;;  %v51_v4 = vld [vmem:[#allocation6 + $0x10] sm:$0xff]  ;;  %vm53_vm2 = vcmask 261120  }
  0x28   :  { %v186_v5 = vpack.c.bf16 %v50_v3, %v49_v2  ;;  %v52_v6 = vld [vmem:[#allocation6 + $0x18] sm:$0xff]  ;;  %s282_s11 = smov [#allocation8]  }
  0x29   :  { %v189_v7 = vpack.c.bf16 %v52_v6, %v51_v4  ;;  %v48_v8 = vld [vmem:[#allocation3] sm:$0x3]  ;;  %v167_v13 = vld [vmem:[%s354_s2] ss:$0 sm:$0xff]  ;;  %s156_s12 = sshll.u32 %s282_s11, 4  ;;  %s157_s12 = int_to_ptr.vmem [resolvable:$true] %s156_s12 }
  0x2a   :  { %187 = vmatpush3.bf16.msra.mxu0 %v186_v5  ;;  %s247_s13 = scalar_lea.vmem %s157_s12, 32  ;;  %p252_p3 = scmp.lt.s32.totalorder %s157_s12, %s157_s12 }
  0x2b   :  { %188 = vmatprep.subr.bf16.mxu0 %v279_v0  ;;  %p248_p2 = scmp.ne.s32.totalorder %s157_s12, %s247_s13  ;;  %p253_p4 = scmp.lt.s32.totalorder %s247_s13, %s247_s13 }
  0x2d   :  { %p254_p5 = por %p253_p4, %p252_p3 }
  0x2e   :  { %190 = vmatpush3.bf16.msra.mxu0 %v189_v7  ;;  %v47_v9 = vld [vmem:[#allocation2] sm:$0x3] }
  0x2f   :  { %p255_p6 = pnand %p254_p5, %p248_p2 }
  0x31   :  { %183 = vmatmul.mubr.msk.f32.vlgmr.msra.gmra.mrb[0].mxu0 %vm53_vm2, %v48_v8 }
 0x104   :  { %v123_v10 = vpop.f32.mrb[0].mxu0 }
 0x105   :  { %v127_v11 = vadd.f32 %v123_v10, %v47_v9  ;;  %v184_v12 = vpop.f32.mrb[1].mxu0 }
 0x107   :  { %129 = vst.msk [vmem:[#allocation2] sm:$0x3] %vm45_vm0, %v127_v11 }
 0x10e   :  { %v133_v14 = vld [vmem:[#allocation2] sm:$0x3] }
 0x10f   :  { %v141_v15 = vadd.f32 %v167_v13, %v133_v14 }
 0x111   :  { %v168_v16 = vmul.f32 -1.442695, %v141_v15 }
 0x113   :  { %199 = vpow2.f32 %v168_v16 }
 0x11d   :  { %v200_v17 = vpop.eup %199 }
 0x11e   :  { %v145_v18 = vadd.f32 1.0, %v200_v17 }
 0x120   :  { %201 = vrcp.f32 %v145_v18 }
 0x12a   :  { %v202_v19 = vpop.eup %201 }
 0x12b   :  { %v148_v20 = vmul.f32 %v202_v19, %v141_v15 }
 0x12d   :  { %149 = vst.msk [vmem:[#allocation8] sm:$0x3] %vm45_vm0, %v148_v20 }
 0x12e   :  { %258 = shalt.err (!%p255_p6)
}
 0x12f   :  { %s259_s15 = scalar_lea.hbm %s355_s3, 32 }
 0x130   :  { %p260_p7 = scmp.ne.s32.totalorder %s355_s3, %s259_s15  ;;  %p263_p8 = scmp.lt.u32.totalorder %s259_s15, %s355_s3 }
 0x132   :  { %p265_p9 = pnand %p263_p8, %p260_p7 }
 0x134   :  { %268 = shalt.err (!%p265_p9)
}
 0x135   :  { %159 = dma.vmem_to_hbm [thread:$0]  %s157_s12, 32, %s355_s3, [#allocation5]  }
 0x136   :  { %273 = dma.done.wait [#allocation5], 32  }
 0x137   :  { %274 = vsyncadd [#allocation5], 4294967264 }
 0x138   :  { %163 = vsyncpa [#allocation4], 1 }
 0x139   :  { %164 = vsyncpa [#allocation7], 1 }
 0x13a   :  { %165 = vsyncpa [#allocation5], 1 }

</bundles_post_ra>
